<compile_context>
chip_gen: v7x
topology: tpu7x:2x2x1
jax: 0.10.0
libtpu: 0.0.40
codegen_flags: <defaults>
</compile_context>

<pallas_src>
import functools

import jax
import jax.numpy as jnp
from jax.experimental import pallas as pl
from jax.experimental.pallas import tpu as pltpu

N_NODES = 30  # fixed by nn.Conv1d(30, num_classes, kernel_size=1)


def _gcn_kernel(graph_ref, x_ref, w1_ref, w2_ref, b12_ref, lin_ref, conv_ref,
                out_ref):
    bb = graph_ref.shape[0]          # samples per grid step
    n = graph_ref.shape[-1]          # nodes (30)
    f = w1_ref.shape[0]              # num_filter
    cin = w1_ref.shape[1]            # input channels
    c = conv_ref.shape[1]            # num_classes

    # ---- normalized adjacency for the whole block (vectorized over bb) ----
    g = graph_ref[...]                                    # (bb, Q, N, N)
    adj = jnp.mean(g, axis=1)                             # torch.mean(graph, 1).real
    eye = jnp.eye(n, dtype=jnp.float32)
    a = jnp.where(adj != 0, 1.0, 0.0).astype(jnp.float32)  # coo_matrix nonzero pattern
    a = jnp.maximum(a, eye)                               # add_remaining_self_loops (w=1)

    # PyG gcn_norm (source_to_target): deg = column sums, aggregation at target:
    #   out[n] = d_n^-1/2 * sum_r A[r, n] * d_r^-1/2 * h[r]
    deg = jnp.sum(a, axis=1, keepdims=True)               # (bb, 1, N), >= 1 (self loops)
    dinv_n = jax.lax.rsqrt(deg)                           # lane-oriented    (bb, 1, N)
    # transpose-free re-orientation of the degree vector onto sublanes:
    dinv_r = jnp.sum(eye * dinv_n, axis=2, keepdims=True)  # sublane-oriented (bb, N, 1)
    ahat = dinv_r * a * dinv_n                            # ahat[b, r, n] = d_r^-.5 A[r,n] d_n^-.5

    # Activations kept as (bb, features, nodes): all matmuls below are
    # canonical batched dot_generals (lhs last dim x rhs second-to-last dim).
    x = x_ref[...]                                        # (bb, Cin, N)
    w1b = jnp.broadcast_to(w1_ref[...], (bb, f, cin))     # (bb, F, Cin)
    w2b = jnp.broadcast_to(w2_ref[...], (bb, f, f))       # (bb, F, F)
    b1 = b12_ref[:, 0:1]                                  # (F, 1)
    b2 = b12_ref[:, 1:2]                                  # (F, 1)

    # ---- GCNConv1: relu(A_hat @ (X W1) + b1) ----
    h = jnp.einsum("bfc,bcn->bfn", w1b, x, preferred_element_type=jnp.float32)
    h = jnp.einsum("bfr,brn->bfn", h, ahat, preferred_element_type=jnp.float32)
    h = jnp.maximum(h + b1, 0.0)
    # TODO(synk): nn.Dropout is stochastic; modeled as eval-mode identity.

    # ---- GCNConv2: relu(A_hat @ (H W2) + b2) ----
    h = jnp.einsum("bgf,bfn->bgn", w2b, h, preferred_element_type=jnp.float32)
    h = jnp.einsum("bgr,brn->bgn", h, ahat, preferred_element_type=jnp.float32)
    h = jnp.maximum(h + b2, 0.0)

    # ---- Linear(num_filter, 1) + ReLU ----
    wlin = jnp.broadcast_to(lin_ref[:, 0:f], (bb, 1, f))  # (bb, 1, F)
    blin = lin_ref[:, f:f + 1]                            # (1, 1)
    s = jnp.einsum("bof,bfn->bon", wlin, h, preferred_element_type=jnp.float32)
    s = jnp.maximum(s + blin, 0.0)                        # (bb, 1, N)

    # ---- Conv1d(30, num_classes, k=1) on (N, 1) input: s @ W[:, :, 0].T + b ----
    wconv = jnp.broadcast_to(conv_ref[0:n, :], (bb, n, c))  # (bb, N, C)
    bconv = conv_ref[n:n + 1, :]                            # (1, C)
    out = jnp.einsum("bon,bnc->boc", s, wconv, preferred_element_type=jnp.float32)
    out_ref[...] = out + bconv                              # single block-wide store


@functools.partial(jax.jit, static_argnames=("block_b",))
def gcn_net_pallas(graph_real, x, params, *, block_b=8):
    B, Q, N, _ = graph_real.shape
    Cin = x.shape[-1]
    F = params["w1"].shape[1]
    C = params["wconv_t"].shape[1]

    bb = min(block_b, B)
    b_pad = pl.cdiv(B, bb) * bb

    # Wrapper-side layout plumbing (free): nodes on lanes, features on sublanes,
    # and small parameters packed into fewer arrays.
    x_t = jnp.swapaxes(x, 1, 2)                                            # (B, Cin, N)
    w1_t = params["w1"].T                                                  # (F, Cin)
    w2_t = params["w2"].T                                                  # (F, F)
    b12 = jnp.concatenate([params["b1"].T, params["b2"].T], axis=1)        # (F, 2)
    lin_all = jnp.concatenate([params["wlin"].T, params["blin"]], axis=1)  # (1, F+1)
    conv_all = jnp.concatenate([params["wconv_t"], params["bconv"]], axis=0)  # (N+1, C)

    if b_pad != B:  # pad batch to a multiple of the block (padding is benign: A=I, x=0)
        graph_real = jnp.pad(graph_real, ((0, b_pad - B), (0, 0), (0, 0), (0, 0)))
        x_t = jnp.pad(x_t, ((0, b_pad - B), (0, 0), (0, 0)))

    out = pl.pallas_call(
        _gcn_kernel,
        out_shape=jax.ShapeDtypeStruct((b_pad, 1, C), jnp.float32),
        grid_spec=pltpu.PrefetchScalarGridSpec(
            num_scalar_prefetch=0,
            grid=(b_pad // bb,),
            in_specs=[
                pl.BlockSpec((bb, Q, N, N), lambda b: (b, 0, 0, 0)),  # graph block
                pl.BlockSpec((bb, Cin, N), lambda b: (b, 0, 0)),      # x block
                pl.BlockSpec((F, Cin), lambda b: (0, 0)),             # W1^T
                pl.BlockSpec((F, F), lambda b: (0, 0)),               # W2^T
                pl.BlockSpec((F, 2), lambda b: (0, 0)),               # [b1^T | b2^T]
                pl.BlockSpec((1, F + 1), lambda b: (0, 0)),           # [wlin^T | blin]
                pl.BlockSpec((N + 1, C), lambda b: (0, 0)),           # [wconv^T ; bconv]
            ],
            out_specs=pl.BlockSpec((bb, 1, C), lambda b: (b, 0, 0)),
        ),
        compiler_params=pltpu.CompilerParams(
            dimension_semantics=("parallel",)),
    )(graph_real, x_t, w1_t, w2_t, b12, lin_all, conv_all)
    return out[:B, 0, :]                                   # (B, num_classes)


def gcn_net_reference(graph_real, x, params):
    """Pure-JAX reference mirroring the PyTorch/PyG semantics."""
    adj = jnp.mean(graph_real, axis=1)                     # (B, N, N)
    N = adj.shape[-1]
    a = jnp.maximum((adj != 0).astype(jnp.float32), jnp.eye(N, dtype=jnp.float32))
    deg = jnp.sum(a, axis=1)                               # column sums, (B, N)
    dinv = jax.lax.rsqrt(deg)
    # prop[b, i, r] = dinv_i * A[r, i] * dinv_r
    prop = dinv[:, :, None] * jnp.swapaxes(a, 1, 2) * dinv[:, None, :]

    h = jnp.einsum("bnm,bmc->bnc", prop, x @ params["w1"]) + params["b1"]
    h = jax.nn.relu(h)
    h = jnp.einsum("bnm,bmc->bnc", prop, h @ params["w2"]) + params["b2"]
    h = jax.nn.relu(h)
    s = jax.nn.relu(h @ params["wlin"] + params["blin"])[..., 0]   # (B, N)
    return s @ params["wconv_t"] + params["bconv"]                 # (B, C)


if __name__ == "__main__":
    B, Q, N = 6, 4, N_NODES
    in_c, num_filter, num_classes = 8, 16, 5

    key = jax.random.PRNGKey(0)
    ks = jax.random.split(key, 12)

    # Deterministic synthetic parameters (shapes from the module __init__).
    params = {
        "w1": 0.2 * jax.random.normal(ks[0], (in_c, num_filter), jnp.float32),
        "b1": 0.1 * jax.random.normal(ks[1], (1, num_filter), jnp.float32),
        "w2": 0.2 * jax.random.normal(ks[2], (num_filter, num_filter), jnp.float32),
        "b2": 0.1 * jax.random.normal(ks[3], (1, num_filter), jnp.float32),
        "wlin": 0.2 * jax.random.normal(ks[4], (num_filter, 1), jnp.float32),
        "blin": 0.1 * jax.random.normal(ks[5], (1, 1), jnp.float32),
        # nn.Conv1d(30, num_classes, 1).weight[:, :, 0] transposed -> (N, C)
        "wconv_t": 0.2 * jax.random.normal(ks[6], (N, num_classes), jnp.float32),
        "bconv": 0.1 * jax.random.normal(ks[7], (1, num_classes), jnp.float32),
    }

    # Inputs: `real` node features, `imag` (unused by forward), complex-valued
    # `graph` represented by its real part (only the real part is used).
    real = jax.random.normal(ks[8], (B, N, in_c), jnp.float32)
    imag = jax.random.normal(ks[9], (B, N, in_c), jnp.float32)  # unused, as in torch forward
    dense = jax.random.normal(ks[10], (B, Q, N, N), jnp.float32)
    mask = (jax.random.uniform(ks[11], (B, Q, N, N)) > 0.6).astype(jnp.float32)
    graph_real = dense * mask                                    # sparse-ish adjacency

    # block_b=4 with B=6 exercises both the batch blocking (grid of 2) and the
    # pad-to-multiple path (6 -> 8 samples).
    out = gcn_net_pallas(graph_real, real, params, block_b=4)
    out = jax.block_until_ready(out)

    ref = gcn_net_reference(graph_real, real, params)
    assert out.shape == (B, num_classes)
    assert jnp.allclose(out, ref, rtol=1e-4, atol=1e-4), (out, ref)

    print("KERNEL_OK")
</pallas_src>

<mosaic_0001>
module attributes {stable_mosaic.version = 11 : i64} {
  func.func @_gcn_kernel(%arg0: i32, %arg1: memref<4x4x30x30xf32, #tpu.memory_space<vmem>>, %arg2: memref<4x8x30xf32, #tpu.memory_space<vmem>>, %arg3: memref<16x8xf32, #tpu.memory_space<vmem>>, %arg4: memref<16x16xf32, #tpu.memory_space<vmem>>, %arg5: memref<16x2xf32, #tpu.memory_space<vmem>>, %arg6: memref<1x17xf32, #tpu.memory_space<vmem>>, %arg7: memref<31x5xf32, #tpu.memory_space<vmem>>, %arg8: memref<4x1x5xf32, #tpu.memory_space<vmem>>) attributes {dimension_semantics = [#tpu.dimension_semantics<parallel>], iteration_bounds = array<i64: 2>, scalar_prefetch = 0 : i64, scratch_operands = 0 : i64, tpu.core_type = #tpu.core_type<tc>, window_params = [{transform_indices = @transform_0, window_bounds = array<i64: 4, 4, 30, 30>}, {transform_indices = @transform_1, window_bounds = array<i64: 4, 8, 30>}, {pipeline_mode = #tpu.pipeline_mode<synchronous>, transform_indices = @transform_2, window_bounds = array<i64: 16, 8>}, {pipeline_mode = #tpu.pipeline_mode<synchronous>, transform_indices = @transform_3, window_bounds = array<i64: 16, 16>}, {pipeline_mode = #tpu.pipeline_mode<synchronous>, transform_indices = @transform_4, window_bounds = array<i64: 16, 2>}, {pipeline_mode = #tpu.pipeline_mode<synchronous>, transform_indices = @transform_5, window_bounds = array<i64: 1, 17>}, {pipeline_mode = #tpu.pipeline_mode<synchronous>, transform_indices = @transform_6, window_bounds = array<i64: 31, 5>}, {transform_indices = @transform_7, window_bounds = array<i64: 4, 1, 5>}]} {
    %c0 = arith.constant 0 : index
    %c0_0 = arith.constant 0 : index
    %c0_1 = arith.constant 0 : index
    %c0_2 = arith.constant 0 : index
    %0 = vector.load %arg1[%c0, %c0_0, %c0_1, %c0_2] : memref<4x4x30x30xf32, #tpu.memory_space<vmem>>, vector<4x4x30x30xf32>
    %cst = arith.constant dense<0.000000e+00> : vector<4x30x30xf32>
    %1 = vector.multi_reduction <add>, %0, %cst [1] : vector<4x4x30x30xf32> to vector<4x30x30xf32>
    %cst_3 = arith.constant 4.000000e+00 : f32
    %2 = vector.broadcast %cst_3 : f32 to vector<4x30x30xf32>
    %3 = arith.divf %1, %2 : vector<4x30x30xf32>
    %4 = tpu.iota {dimensions = array<i32: 0>} : vector<30x30xi32>
    %5 = tpu.iota {dimensions = array<i32: 1>} : vector<30x30xi32>
    %c0_i32 = arith.constant 0 : i32
    %6 = vector.broadcast %c0_i32 : i32 to vector<30x30xi32>
    %7 = arith.addi %4, %6 : vector<30x30xi32>
    %8 = arith.cmpi eq, %7, %5 : vector<30x30xi32>
    %9 = arith.extui %8 : vector<30x30xi1> to vector<30x30xi32>
    %10 = arith.sitofp %9 : vector<30x30xi32> to vector<30x30xf32>
    %cst_4 = arith.constant 0.000000e+00 : f32
    %11 = vector.broadcast %cst_4 : f32 to vector<4x30x30xf32>
    %12 = arith.cmpf one, %3, %11 : vector<4x30x30xf32>
    %cst_5 = arith.constant 1.000000e+00 : f32
    %cst_6 = arith.constant 0.000000e+00 : f32
    %13 = vector.broadcast %cst_5 : f32 to vector<4x30x30xf32>
    %14 = vector.broadcast %cst_6 : f32 to vector<4x30x30xf32>
    %15 = arith.select %12, %13, %14 : vector<4x30x30xi1>, vector<4x30x30xf32>
    %16 = vector.shape_cast %10 : vector<30x30xf32> to vector<1x30x30xf32>
    %17 = vector.broadcast %16 : vector<1x30x30xf32> to vector<4x30x30xf32>
    %18 = arith.maximumf %15, %17 : vector<4x30x30xf32>
    %cst_7 = arith.constant dense<0.000000e+00> : vector<4x30xf32>
    %19 = vector.multi_reduction <add>, %18, %cst_7 [1] : vector<4x30x30xf32> to vector<4x30xf32>
    %20 = vector.shape_cast %19 : vector<4x30xf32> to vector<4x1x30xf32>
    %21 = math.rsqrt %20 : vector<4x1x30xf32>
    %22 = vector.shape_cast %10 : vector<30x30xf32> to vector<1x30x30xf32>
    %23 = vector.broadcast %22 : vector<1x30x30xf32> to vector<4x30x30xf32>
    %24 = vector.broadcast %21 : vector<4x1x30xf32> to vector<4x30x30xf32>
    %25 = arith.mulf %23, %24 : vector<4x30x30xf32>
    %cst_8 = arith.constant dense<0.000000e+00> : vector<4x30xf32>
    %26 = vector.multi_reduction <add>, %25, %cst_8 [2] : vector<4x30x30xf32> to vector<4x30xf32>
    %27 = vector.shape_cast %26 : vector<4x30xf32> to vector<4x30x1xf32>
    %28 = vector.broadcast %27 : vector<4x30x1xf32> to vector<4x30x30xf32>
    %29 = arith.mulf %28, %18 : vector<4x30x30xf32>
    %30 = vector.broadcast %21 : vector<4x1x30xf32> to vector<4x30x30xf32>
    %31 = arith.mulf %29, %30 : vector<4x30x30xf32>
    %c0_9 = arith.constant 0 : index
    %c0_10 = arith.constant 0 : index
    %c0_11 = arith.constant 0 : index
    %32 = vector.load %arg2[%c0_9, %c0_10, %c0_11] : memref<4x8x30xf32, #tpu.memory_space<vmem>>, vector<4x8x30xf32>
    %c0_12 = arith.constant 0 : index
    %c0_13 = arith.constant 0 : index
    %33 = vector.load %arg3[%c0_12, %c0_13] : memref<16x8xf32, #tpu.memory_space<vmem>>, vector<16x8xf32>
    %34 = vector.shape_cast %33 : vector<16x8xf32> to vector<1x16x8xf32>
    %35 = vector.broadcast %34 : vector<1x16x8xf32> to vector<4x16x8xf32>
    %c0_14 = arith.constant 0 : index
    %c0_15 = arith.constant 0 : index
    %36 = vector.load %arg4[%c0_14, %c0_15] : memref<16x16xf32, #tpu.memory_space<vmem>>, vector<16x16xf32>
    %37 = vector.shape_cast %36 : vector<16x16xf32> to vector<1x16x16xf32>
    %38 = vector.broadcast %37 : vector<1x16x16xf32> to vector<4x16x16xf32>
    %c0_16 = arith.constant 0 : index
    %c0_17 = arith.constant 0 : index
    %39 = vector.load %arg5[%c0_16, %c0_17] : memref<16x2xf32, #tpu.memory_space<vmem>>, vector<16x1xf32>
    %c0_18 = arith.constant 0 : index
    %c1 = arith.constant 1 : index
    %40 = vector.load %arg5[%c0_18, %c1] : memref<16x2xf32, #tpu.memory_space<vmem>>, vector<16x1xf32>
    "tpu.trace_start"() <{level = 10 : i32, message = "bfc,bcn->bfn"}> : () -> ()
    %cst_19 = arith.constant dense<0.000000e+00> : vector<4x16x30xf32>
    %41 = tpu.matmul %35, %32, %cst_19 {dimension_numbers = #tpu.dot_dimension_numbers<[2], [1], [1], [2], [0, 0, 0, 1, 1, 2], [0], [0]>} : vector<4x16x8xf32>, vector<4x8x30xf32>, vector<4x16x30xf32> -> vector<4x16x30xf32>
    "tpu.trace_stop"() : () -> ()
    "tpu.trace_start"() <{level = 10 : i32, message = "bfr,brn->bfn"}> : () -> ()
    %cst_20 = arith.constant dense<0.000000e+00> : vector<4x16x30xf32>
    %42 = tpu.matmul %41, %31, %cst_20 {dimension_numbers = #tpu.dot_dimension_numbers<[2], [1], [1], [2], [0, 0, 0, 1, 1, 2], [0], [0]>} : vector<4x16x30xf32>, vector<4x30x30xf32>, vector<4x16x30xf32> -> vector<4x16x30xf32>
    "tpu.trace_stop"() : () -> ()
    %43 = vector.shape_cast %39 : vector<16x1xf32> to vector<1x16x1xf32>
    %44 = vector.broadcast %43 : vector<1x16x1xf32> to vector<4x16x30xf32>
    %45 = arith.addf %42, %44 : vector<4x16x30xf32>
    %cst_21 = arith.constant 0.000000e+00 : f32
    %46 = vector.broadcast %cst_21 : f32 to vector<4x16x30xf32>
    %47 = arith.maximumf %45, %46 : vector<4x16x30xf32>
    "tpu.trace_start"() <{level = 10 : i32, message = "bgf,bfn->bgn"}> : () -> ()
    %cst_22 = arith.constant dense<0.000000e+00> : vector<4x16x30xf32>
    %48 = tpu.matmul %38, %47, %cst_22 {dimension_numbers = #tpu.dot_dimension_numbers<[2], [1], [1], [2], [0, 0, 0, 1, 1, 2], [0], [0]>} : vector<4x16x16xf32>, vector<4x16x30xf32>, vector<4x16x30xf32> -> vector<4x16x30xf32>
    "tpu.trace_stop"() : () -> ()
    "tpu.trace_start"() <{level = 10 : i32, message = "bgr,brn->bgn"}> : () -> ()
    %cst_23 = arith.constant dense<0.000000e+00> : vector<4x16x30xf32>
    %49 = tpu.matmul %48, %31, %cst_23 {dimension_numbers = #tpu.dot_dimension_numbers<[2], [1], [1], [2], [0, 0, 0, 1, 1, 2], [0], [0]>} : vector<4x16x30xf32>, vector<4x30x30xf32>, vector<4x16x30xf32> -> vector<4x16x30xf32>
    "tpu.trace_stop"() : () -> ()
    %50 = vector.shape_cast %40 : vector<16x1xf32> to vector<1x16x1xf32>
    %51 = vector.broadcast %50 : vector<1x16x1xf32> to vector<4x16x30xf32>
    %52 = arith.addf %49, %51 : vector<4x16x30xf32>
    %cst_24 = arith.constant 0.000000e+00 : f32
    %53 = vector.broadcast %cst_24 : f32 to vector<4x16x30xf32>
    %54 = arith.maximumf %52, %53 : vector<4x16x30xf32>
    %c0_25 = arith.constant 0 : index
    %c0_26 = arith.constant 0 : index
    %55 = vector.load %arg6[%c0_25, %c0_26] : memref<1x17xf32, #tpu.memory_space<vmem>>, vector<1x16xf32>
    %56 = vector.shape_cast %55 : vector<1x16xf32> to vector<1x1x16xf32>
    %57 = vector.broadcast %56 : vector<1x1x16xf32> to vector<4x1x16xf32>
    %c0_27 = arith.constant 0 : index
    %c16 = arith.constant 16 : index
    %58 = vector.load %arg6[%c0_27, %c16] : memref<1x17xf32, #tpu.memory_space<vmem>>, vector<1x1xf32>
    "tpu.trace_start"() <{level = 10 : i32, message = "bof,bfn->bon"}> : () -> ()
    %cst_28 = arith.constant dense<0.000000e+00> : vector<4x1x30xf32>
    %59 = tpu.matmul %57, %54, %cst_28 {dimension_numbers = #tpu.dot_dimension_numbers<[2], [1], [1], [2], [0, 0, 0, 1, 1, 2], [0], [0]>} : vector<4x1x16xf32>, vector<4x16x30xf32>, vector<4x1x30xf32> -> vector<4x1x30xf32>
    "tpu.trace_stop"() : () -> ()
    %60 = vector.shape_cast %58 : vector<1x1xf32> to vector<1x1x1xf32>
    %61 = vector.broadcast %60 : vector<1x1x1xf32> to vector<4x1x30xf32>
    %62 = arith.addf %59, %61 : vector<4x1x30xf32>
    %cst_29 = arith.constant 0.000000e+00 : f32
    %63 = vector.broadcast %cst_29 : f32 to vector<4x1x30xf32>
    %64 = arith.maximumf %62, %63 : vector<4x1x30xf32>
    %c0_30 = arith.constant 0 : index
    %c0_31 = arith.constant 0 : index
    %65 = vector.load %arg7[%c0_30, %c0_31] : memref<31x5xf32, #tpu.memory_space<vmem>>, vector<30x5xf32>
    %66 = vector.shape_cast %65 : vector<30x5xf32> to vector<1x30x5xf32>
    %67 = vector.broadcast %66 : vector<1x30x5xf32> to vector<4x30x5xf32>
    %c30 = arith.constant 30 : index
    %c0_32 = arith.constant 0 : index
    %68 = vector.load %arg7[%c30, %c0_32] : memref<31x5xf32, #tpu.memory_space<vmem>>, vector<1x5xf32>
    "tpu.trace_start"() <{level = 10 : i32, message = "bon,bnc->boc"}> : () -> ()
    %cst_33 = arith.constant dense<0.000000e+00> : vector<4x1x5xf32>
    %69 = tpu.matmul %64, %67, %cst_33 {dimension_numbers = #tpu.dot_dimension_numbers<[2], [1], [1], [2], [0, 0, 0, 1, 1, 2], [0], [0]>} : vector<4x1x30xf32>, vector<4x30x5xf32>, vector<4x1x5xf32> -> vector<4x1x5xf32>
    "tpu.trace_stop"() : () -> ()
    %70 = vector.shape_cast %68 : vector<1x5xf32> to vector<1x1x5xf32>
    %71 = vector.broadcast %70 : vector<1x1x5xf32> to vector<4x1x5xf32>
    %72 = arith.addf %69, %71 : vector<4x1x5xf32>
    %c0_34 = arith.constant 0 : index
    %c0_35 = arith.constant 0 : index
    %c0_36 = arith.constant 0 : index
    %73 = vector.load %arg8[%c0_34, %c0_35, %c0_36] : memref<4x1x5xf32, #tpu.memory_space<vmem>>, vector<4x1x5xf32>
    tpu.vector_store %arg8[%c0_34, %c0_35, %c0_36], %72 {strides = array<i32>} : memref<4x1x5xf32, #tpu.memory_space<vmem>>, vector<4x1x5xf32>,
    return
  }
  func.func @transform_0(%arg0: i32) -> (i32, i32, i32, i32) {
    %c0_i32 = arith.constant 0 : i32
    %c0_i32_0 = arith.constant 0 : i32
    %c0_i32_1 = arith.constant 0 : i32
    %c0_i32_2 = arith.constant 0 : i32
    return %arg0, %c0_i32, %c0_i32_0, %c0_i32_1 : i32, i32, i32, i32
  }
  func.func @transform_1(%arg0: i32) -> (i32, i32, i32) {
    %c0_i32 = arith.constant 0 : i32
    %c0_i32_0 = arith.constant 0 : i32
    %c0_i32_1 = arith.constant 0 : i32
    return %arg0, %c0_i32, %c0_i32_0 : i32, i32, i32
  }
  func.func @transform_2(%arg0: i32) -> (i32, i32) {
    %c0_i32 = arith.constant 0 : i32
    %c0_i32_0 = arith.constant 0 : i32
    %c0_i32_1 = arith.constant 0 : i32
    return %c0_i32, %c0_i32_0 : i32, i32
  }
  func.func @transform_3(%arg0: i32) -> (i32, i32) {
    %c0_i32 = arith.constant 0 : i32
    %c0_i32_0 = arith.constant 0 : i32
    %c0_i32_1 = arith.constant 0 : i32
    return %c0_i32, %c0_i32_0 : i32, i32
  }
  func.func @transform_4(%arg0: i32) -> (i32, i32) {
    %c0_i32 = arith.constant 0 : i32
    %c0_i32_0 = arith.constant 0 : i32
    %c0_i32_1 = arith.constant 0 : i32
    return %c0_i32, %c0_i32_0 : i32, i32
  }
  func.func @transform_5(%arg0: i32) -> (i32, i32) {
    %c0_i32 = arith.constant 0 : i32
    %c0_i32_0 = arith.constant 0 : i32
    %c0_i32_1 = arith.constant 0 : i32
    return %c0_i32, %c0_i32_0 : i32, i32
  }
  func.func @transform_6(%arg0: i32) -> (i32, i32) {
    %c0_i32 = arith.constant 0 : i32
    %c0_i32_0 = arith.constant 0 : i32
    %c0_i32_1 = arith.constant 0 : i32
    return %c0_i32, %c0_i32_0 : i32, i32
  }
  func.func @transform_7(%arg0: i32) -> (i32, i32, i32) {
    %c0_i32 = arith.constant 0 : i32
    %c0_i32_0 = arith.constant 0 : i32
    %c0_i32_1 = arith.constant 0 : i32
    return %arg0, %c0_i32, %c0_i32_0 : i32, i32, i32
  }
}

</mosaic_0001>

<bundles_post_ra>
// kernel: gcn_net_pallas.1
= control target key start
LH: loop header
LB: loop body
LE: loop exit
PB: predicated region body
PF: predicated region fallthrough
CT: control target
= control target key end

     0   :  { %s3306_s24 = smov 0   ;;  %s3904_s0 = inlined_call_operand.vmem [shape: f32[8,4,30,30], index: 0, kind: input, shape index: {}]   ;;  %s3905_s1 = inlined_call_operand.vmem [shape: f32[8,8,30], index: 1, kind: input, shape index: {}]   ;;  %s3906_s2 = inlined_call_operand.vmem [shape: f32[16,8], index: 2, kind: input, shape index: {}]   ;;  %s3907_s3 = inlined_call_operand.vmem [shape: f32[16,16], index: 3, kind: input, shape index: {}]   ;;  %s3908_s4 = inlined_call_operand.vmem [shape: f32[16,2], index: 4, kind: input, shape index: {}]   ;;  %s3909_s5 = inlined_call_operand.vmem [shape: f32[1,17], index: 5, kind: input, shape index: {}]   ;;  %s3910_s6 = inlined_call_operand.vmem [shape: f32[31,5], index: 6, kind: input, shape index: {}]   ;;  %s3911_s7 = inlined_call_operand.vmem [shape: f32[8,1,5], index: 7, kind: output, shape index: {}]  }
   0x1 LB: > { %s2701_s25 = sadd.s32 4294967295, %s3257_s24   ;;  %p2705_p0 = scmp.ge.s32.totalorder %s3257_s24, 1  ;;  %s3257_s24 = sphi %s3306_s24, %s17_s24  }
   0x2   : > { %p250_p1 = scmp.lt.s32.totalorder %s3257_s24, 3 }
   0x4   : > { %p251_p2 = pnand %p2705_p0, %p250_p1 }
   0x5   : > { %s2706_s26 = sshll.u32 (!%p251_p2), %s2701_s25, 2  ;;  %v723_v0 = vld [vmem:[%s3906_s2] sm:$0xff] (!%p251_p2)  ;;  %vm729_vm0 = vcmask (!%p251_p2), 64512   ;;  %v500_v1 = vlaneseq (!%p251_p2)  ;;  %vm369_vm1 = vcmask (!%p251_p2), 244736   ;;  %v724_v5 = vld [vmem:[%s3906_s2 + $0x8] sm:$0xff] (!%p251_p2)  ;;  %vm391_vm2 = vcmask (!%p251_p2), 242688  }
   0x6   : > { %254 = sbr.rel (%p251_p2) target bundleno = 1374 (0x55e), region = 48  ;;  %p288_p3 = scmp.lt.s32.totalorder (!%p251_p2), %s2706_s26, 7  ;;  %2881 = vmatprep.mubr.msk.f32.mxu0 (!%p251_p2), %vm729_vm0, %v723_v0  ;;  %2886 = vmatprep.mubr.msk.f32.mxu1 (!%p251_p2), %vm729_vm0, %v723_v0  ;;  %v3259_v41 = vmov (!%p251_p2), 0.0  }
   0x7   : > { %v3331_v2 = vand.u32 (!%p251_p2), 127, %v500_v1  ;;  %v3338_v9 = vshrl.u32 (!%p251_p2), %v500_v1, 7 }
   0x9   : > { %vm507_vm3 = vcmp.eq.s32.totalorder (!%p251_p2), %v3338_v9, %v3331_v2  ;;  %v3368_v34 = vadd.s32 (!%p251_p2), 8, %v3338_v9  ;;  %v3371_v35 = vadd.s32 (!%p251_p2), 16, %v3338_v9  ;;  %v3379_v40 = vadd.s32 (!%p251_p2), 24, %v3338_v9 }
   0xa   : > { %v3385_v42 = vsel (!%p251_p2), %vm507_vm3, 1.0, %v3259_v41 }
   0xb   : > { %vm508_vm4 = vcmp.eq.s32.totalorder (!%p251_p2), %v3368_v34, %v3331_v2  ;;  %vm509_vm5 = vcmp.eq.s32.totalorder (!%p251_p2), %v3371_v35, %v3331_v2  ;;  %vm510_vm6 = vcmp.eq.s32.totalorder (!%p251_p2), %v3379_v40, %v3331_v2 }
   0xc   : > { %v3473_v35 = vsel (!%p251_p2), %vm508_vm4, 1.0, %v3259_v41  ;;  %v3479_v40 = vsel (!%p251_p2), %vm510_vm6, 1.0, %v3259_v41 }
   0xd   : > { %s3915_s26 = smov (!%p288_p3, %s2706_s26), 7 }
   0xe   : > { %s2770_s29 = sshll.u32 %s3915_s26, 7  ;;  %s2710_s30 = sshll.u32 %s3915_s26, 3 }
   0xf   : > { %s3326_s10 = scalar_lea.vmem %s3904_s0, %s2770_s29  ;;  %s298_s13 = scalar_lea.vmem %s3905_s1, %s2710_s30 }
  0x10   : > { %v719_v3 = vld [vmem:[%s298_s13] sm:$0xff]  ;;  %v720_v4 = vld [vmem:[%s298_s13 + $0x8] sm:$0xff]  ;;  %v721_v6 = vld [vmem:[%s298_s13 + $0x10] sm:$0xff]  ;;  %s303_s17 = scalar_lea.vmem %s3911_s7, %s3915_s26 }
  0x11   : > { %2879 = vmatprep.subr.mxu0 %v719_v3  ;;  %2884 = vmatprep.subr.mxu1 %v720_v4  ;;  %v321_v7 = vld [vmem:[%s3326_s10 + $0x80] sm:$0xff]  ;;  %v322_v8 = vld [vmem:[%s3326_s10 + $0x88] sm:$0xff]  ;;  %v722_v10 = vld [vmem:[%s298_s13 + $0x18] sm:$0xff] }
  0x12   : > { %2880 = vmatpush3.msra.mxu0 %v719_v3  ;;  %2885 = vmatpush3.msra.mxu1 %v720_v4  ;;  %v323_v11 = vld [vmem:[%s3326_s10 + $0x90] sm:$0xff]  ;;  %v325_v12 = vld [vmem:[%s3326_s10 + $0xa0] sm:$0xff]  ;;  %v399_v13 = vsel %vm369_vm1, %v321_v7, 0.0  ;;  %v324_v14 = vld [vmem:[%s3326_s10 + $0x98] sm:$0x3f]  ;;  %v406_v18 = vsel %vm369_vm1, %v322_v8, 0.0 }
  0x13   : > { %2882 = vmatmul.mubr.msk.f32.vlgmr.msra.gmra.mrb[0].mxu0 %vm729_vm0, %v724_v5  ;;  %2887 = vmatmul.mubr.msk.f32.vlgmr.msra.gmra.mrb[0].mxu1 %vm729_vm0, %v724_v5  ;;  %v326_v15 = vld [vmem:[%s3326_s10 + $0xa8] sm:$0xff]  ;;  %v327_v16 = vld [vmem:[%s3326_s10 + $0xb0] sm:$0xff]  ;;  %v400_v17 = vsel %vm369_vm1, %v325_v12, 0.0  ;;  %v329_v19 = vld [vmem:[%s3326_s10 + $0xc0] sm:$0xff]  ;;  %v413_v23 = vsel %vm369_vm1, %v323_v11, 0.0  ;;  %v420_v33 = vsel %vm391_vm2, %v324_v14, 0.0 }
  0x14   : > { %2889 = vmatprep.subr.mxu0 %v721_v6  ;;  %2891 = vmatprep.mubr.msk.f32.mxu0 %vm729_vm0, %v723_v0  ;;  %v330_v20 = vld [vmem:[%s3326_s10 + $0xc8] sm:$0xff]  ;;  %v401_v21 = vadd.f32 %v400_v17, %v399_v13  ;;  %v407_v22 = vsel %vm369_vm1, %v326_v15, 0.0  ;;  %v414_v24 = vsel %vm369_vm1, %v327_v16, 0.0  ;;  %v328_v25 = vld [vmem:[%s3326_s10 + $0xb8] sm:$0x3f]  ;;  %v331_v26 = vld [vmem:[%s3326_s10 + $0xd0] sm:$0xff] }
  0x15   : > { %2890 = vmatpush3.msra.mxu0 %v721_v6  ;;  %2894 = vmatprep.subr.mxu1 %v722_v10  ;;  %v332_v27 = vld [vmem:[%s3326_s10 + $0xd8] sm:$0x3f]  ;;  %v402_v28 = vsel %vm369_vm1, %v329_v19, 0.0  ;;  %v333_v29 = vld [vmem:[%s3326_s10 + $0xe0] sm:$0xff]  ;;  %v334_v30 = vld [vmem:[%s3326_s10 + $0xe8] sm:$0xff]  ;;  %v408_v32 = vadd.f32 %v407_v22, %v406_v18  ;;  %v409_v38 = vsel %vm369_vm1, %v330_v20, 0.0  ;;  %v415_v39 = vadd.f32 %v414_v24, %v413_v23 }
  0x16   : > { %2895 = vmatpush3.msra.mxu1 %v722_v10  ;;  %2896 = vmatprep.mubr.msk.f32.mxu1 %vm729_vm0, %v723_v0  ;;  %v337_v31 = vld [vmem:[%s3326_s10 + $0x100] sm:$0xff]  ;;  %v335_v36 = vld [vmem:[%s3326_s10 + $0xf0] sm:$0xff]  ;;  %v336_v37 = vld [vmem:[%s3326_s10 + $0xf8] sm:$0x3f]  ;;  %v403_v45 = vadd.f32 %v402_v28, %v401_v21  ;;  %v416_v46 = vsel %vm369_vm1, %v331_v26, 0.0  ;;  %v421_v47 = vsel %vm391_vm2, %v328_v25, 0.0 }
  0x17   : > { %2892 = vmatmul.mubr.msk.f32.vlgmr.msra.gmra.mrb[2].mxu0 %vm729_vm0, %v724_v5  ;;  %2897 = vmatmul.mubr.msk.f32.vlgmr.msra.gmra.mrb[2].mxu1 %vm729_vm0, %v724_v5  ;;  %v338_v43 = vld [vmem:[%s3326_s10 + $0x108] sm:$0xff]  ;;  %v341_v44 = vld [vmem:[%s3326_s10 + $0x120] sm:$0xff]  ;;  %v423_v48 = vsel %vm391_vm2, %v332_v27, 0.0  ;;  %v404_v52 = vsel %vm369_vm1, %v333_v29, 0.0  ;;  %v411_v53 = vsel %vm369_vm1, %v334_v30, 0.0  ;;  %v422_v54 = vadd.f32 %v421_v47, %v420_v33  ;;  %v339_v56 = vld [vmem:[%s3326_s10 + $0x110] sm:$0xff] }
  0x18   : > { %v342_v49 = vld [vmem:[%s3326_s10 + $0x128] sm:$0xff]  ;;  %v345_v50 = vld [vmem:[%s3326_s10 + $0x140] sm:$0xff]  ;;  %v427_v55 = vsel %vm369_vm1, %v337_v31, 0.0  ;;  %v410_v58 = vadd.f32 %v409_v38, %v408_v32  ;;  %v418_v59 = vsel %vm369_vm1, %v335_v36, 0.0  ;;  %v428_v60 = vsel %vm369_vm1, %v341_v44, 0.0  ;;  %v343_v62 = vld [vmem:[%s3326_s10 + $0x130] sm:$0xff] }
  0x19   : > { %v346_v51 = vld [vmem:[%s3326_s10 + $0x148] sm:$0xff]  ;;  %v349_v57 = vld [vmem:[%s3326_s10 + $0x160] sm:$0xff]  ;;  %v430_v61 = vsel %vm369_vm1, %v345_v50, 0.0  ;;  %v347_v63 = vld [vmem:[%s3326_s10 + $0x150] sm:$0xff]  ;;  %v417_v1 = vadd.f32 %v416_v46, %v415_v39  ;;  %v424_v3 = vadd.f32 %v423_v48, %v422_v54  ;;  %v429_v4 = vadd.f32 %v428_v60, %v427_v55 }
  0x1a   : > { %v350_v0 = vld [vmem:[%s3326_s10 + $0x168] sm:$0xff]  ;;  %v434_v5 = vsel %vm369_vm1, %v338_v43, 0.0  ;;  %v340_v6 = vld [vmem:[%s3326_s10 + $0x118] sm:$0x3f]  ;;  %v3408_v7 = vadd.f32 %v404_v52, %v403_v45  ;;  %v425_v8 = vsel %vm391_vm2, %v336_v37, 0.0  ;;  %v435_v10 = vsel %vm369_vm1, %v342_v49, 0.0 }
  0x1b   : > { %v437_v11 = vsel %vm369_vm1, %v346_v51, 0.0  ;;  %v344_v12 = vld [vmem:[%s3326_s10 + $0x138] sm:$0x3f]  ;;  %v431_v14 = vadd.f32 %v430_v61, %v429_v4  ;;  %v432_v15 = vsel %vm369_vm1, %v349_v57, 0.0  ;;  %v436_v16 = vadd.f32 %v435_v10, %v434_v5  ;;  %v351_v18 = vld [vmem:[%s3326_s10 + $0x170] sm:$0xff]  ;;  %v353_v24 = vld [vmem:[%s3326_s10 + $0x180] sm:$0xff] }
  0x1c   : > { %v348_v13 = vld [vmem:[%s3326_s10 + $0x158] sm:$0x3f]  ;;  %v441_v17 = vsel %vm369_vm1, %v339_v56, 0.0  ;;  %v3419_v20 = vadd.f32 %v411_v53, %v410_v58  ;;  %v439_v21 = vsel %vm369_vm1, %v350_v0, 0.0  ;;  %v442_v22 = vsel %vm369_vm1, %v343_v62, 0.0  ;;  %v357_v25 = vld [vmem:[%s3326_s10 + $0x1a0] sm:$0xff] }
  0x1d   : > { %v352_v19 = vld [vmem:[%s3326_s10 + $0x178] sm:$0x3f]  ;;  %v444_v23 = vsel %vm369_vm1, %v347_v63, 0.0  ;;  %v361_v26 = vld [vmem:[%s3326_s10 + $0x1c0] sm:$0xff]  ;;  %v419_v27 = vadd.f32 %v418_v59, %v417_v1  ;;  %v426_v28 = vadd.f32 %v425_v8, %v424_v3  ;;  %v438_v29 = vadd.f32 %v437_v11, %v436_v16  ;;  %v354_v31 = vld [vmem:[%s3326_s10 + $0x188] sm:$0xff] }
  0x1e   : > { %v443_v30 = vadd.f32 %v442_v22, %v441_v17  ;;  %v355_v32 = vld [vmem:[%s3326_s10 + $0x190] sm:$0xff]  ;;  %v365_v33 = vld [vmem:[%s3326_s10 + $0x1e0] sm:$0xff]  ;;  %v433_v36 = vadd.f32 %v432_v15, %v431_v14  ;;  %v448_v37 = vsel %vm391_vm2, %v340_v6, 0.0  ;;  %v449_v38 = vsel %vm391_vm2, %v344_v12, 0.0  ;;  %v356_v43 = vld [vmem:[%s3326_s10 + $0x198] sm:$0x3f] }
  0x1f   : > { %v451_v39 = vsel %vm391_vm2, %v348_v13, 0.0  ;;  %v358_v44 = vld [vmem:[%s3326_s10 + $0x1a8] sm:$0xff]  ;;  %v440_v46 = vadd.f32 %v439_v21, %v438_v29  ;;  %v446_v48 = vsel %vm369_vm1, %v351_v18, 0.0  ;;  %v450_v49 = vadd.f32 %v449_v38, %v448_v37  ;;  %v359_v50 = vld [vmem:[%s3326_s10 + $0x1b0] sm:$0xff]  ;;  %v360_v56 = vld [vmem:[%s3326_s10 + $0x1b8] sm:$0x3f] }
  0x20   : > { %v362_v45 = vld [vmem:[%s3326_s10 + $0x1c8] sm:$0xff]  ;;  %v445_v47 = vadd.f32 %v444_v23, %v443_v30  ;;  %v453_v52 = vsel %vm391_vm2, %v352_v19, 0.0  ;;  %v455_v53 = vsel %vm369_vm1, %v353_v24, 0.0  ;;  %v456_v54 = vsel %vm369_vm1, %v357_v25, 0.0  ;;  %v363_v57 = vld [vmem:[%s3326_s10 + $0x1d0] sm:$0xff] }
  0x21   : > { %v366_v51 = vld [vmem:[%s3326_s10 + $0x1e8] sm:$0xff]  ;;  %v458_v55 = vsel %vm369_vm1, %v361_v26, 0.0  ;;  %v452_v58 = vadd.f32 %v451_v39, %v450_v49  ;;  %v457_v59 = vadd.f32 %v456_v54, %v455_v53  ;;  %v460_v60 = vsel %vm369_vm1, %v365_v33, 0.0  ;;  %v364_v62 = vld [vmem:[%s3326_s10 + $0x1d8] sm:$0x3f]  ;;  %v367_v63 = vld [vmem:[%s3326_s10 + $0x1f0] sm:$0xff] }
  0x22   : > { %v462_v61 = vsel %vm369_vm1, %v354_v31, 0.0  ;;  %v447_v0 = vadd.f32 %v446_v48, %v445_v47  ;;  %v463_v1 = vsel %vm369_vm1, %v358_v44, 0.0  ;;  %v465_v3 = vsel %vm369_vm1, %v362_v45, 0.0  ;;  %v368_v11 = vld [vmem:[%s3326_s10 + $0x1f8] sm:$0x3f] }
  0x23   : > { %v469_v4 = vsel %vm369_vm1, %v355_v32, 0.0  ;;  %v459_v5 = vadd.f32 %v458_v55, %v457_v59  ;;  %v464_v6 = vadd.f32 %v463_v1, %v462_v61  ;;  %v467_v8 = vsel %vm369_vm1, %v366_v51, 0.0 }
  0x24   : > { %v470_v10 = vsel %vm369_vm1, %v359_v50, 0.0  ;;  %v454_v12 = vadd.f32 %v453_v52, %v452_v58  ;;  %v472_v14 = vsel %vm369_vm1, %v363_v57, 0.0  ;;  %v476_v15 = vsel %vm391_vm2, %v356_v43, 0.0 }
  0x25   : > { %v471_v13 = vadd.f32 %v470_v10, %v469_v4  ;;  %v466_v16 = vadd.f32 %v465_v3, %v464_v6  ;;  %v474_v17 = vsel %vm369_vm1, %v367_v63, 0.0  ;;  %v477_v18 = vsel %vm391_vm2, %v360_v56, 0.0  ;;  %v305_v3 = vld [vmem:[%s3326_s10] sm:$0xff] }
  0x26   : > { %v479_v19 = vsel %vm391_vm2, %v364_v62, 0.0  ;;  %v461_v21 = vadd.f32 %v460_v60, %v459_v5  ;;  %v478_v23 = vadd.f32 %v477_v18, %v476_v15  ;;  %v488_v24 = vmul.f32 0.25, %v3408_v7  ;;  %v309_v6 = vld [vmem:[%s3326_s10 + $0x20] sm:$0xff]  ;;  %v310_v18 = vld [vmem:[%s3326_s10 + $0x28] sm:$0xff] }
  0x27   : > { %v473_v22 = vadd.f32 %v472_v14, %v471_v13  ;;  %v468_v25 = vadd.f32 %v467_v8, %v466_v16  ;;  %v481_v26 = vsel %vm391_vm2, %v368_v11, 0.0  ;;  %v489_v29 = vmul.f32 0.25, %v3419_v20  ;;  %v313_v8 = vld [vmem:[%s3326_s10 + $0x40] sm:$0xff]  ;;  %v306_v14 = vld [vmem:[%s3326_s10 + $0x8] sm:$0xff] }
  0x28   : > { %v490_v30 = vmul.f32 0.25, %v419_v27  ;;  %v480_v32 = vadd.f32 %v479_v19, %v478_v23  ;;  %v491_v33 = vmul.f32 0.25, %v426_v28  ;;  %v492_v37 = vmul.f32 0.25, %v433_v36  ;;  %v314_v19 = vld [vmem:[%s3326_s10 + $0x48] sm:$0xff] }
  0x29   : > { %v475_v31 = vadd.f32 %v474_v17, %v473_v22  ;;  %v493_v38 = vmul.f32 0.25, %v440_v46  ;;  %v494_v39 = vmul.f32 0.25, %v447_v0  ;;  %v495_v7 = vmul.f32 0.25, %v454_v12 }
  0x2a   : > { %v482_v43 = vadd.f32 %v481_v26, %v480_v32  ;;  %v496_v44 = vmul.f32 0.25, %v461_v21  ;;  %vm523_vm7 = vcmp.ne.f32.partialorder %v488_v24, 0.0  ;;  %v497_v45 = vmul.f32 0.25, %v468_v25  ;;  %v317_v21 = vld [vmem:[%s3326_s10 + $0x60] sm:$0xff]  ;;  %v311_v32 = vld [vmem:[%s3326_s10 + $0x30] sm:$0xff] }
  0x2b   : > { %v498_v47 = vmul.f32 0.25, %v475_v31  ;;  %vm524_vm8 = vcmp.ne.f32.partialorder %v489_v29, 0.0  ;;  %vm525_vm9 = vcmp.ne.f32.partialorder %v490_v30, 0.0  ;;  %v3476_v27 = vsel %vm509_vm5, 1.0, %v3259_v41  ;;  %v307_v31 = vld [vmem:[%s3326_s10 + $0x10] sm:$0xff] }
  0x2c   : > { %v499_v20 = vmul.f32 0.25, %v482_v43  ;;  %vm526_vm10 = vcmp.ne.f32.partialorder %v491_v33, 0.0  ;;  %vm527_vm11 = vcmp.ne.f32.partialorder %v492_v37, 0.0  ;;  %vm528_vm12 = vcmp.ne.f32.partialorder %v493_v38, 0.0  ;;  %v318_v33 = vld [vmem:[%s3326_s10 + $0x68] sm:$0xff]  ;;  %v315_v43 = vld [vmem:[%s3326_s10 + $0x50] sm:$0xff] }
  0x2d   : > { %v539_v28 = vsel %vm523_vm7, 1.0, %v3259_v41  ;;  %vm529_vm13 = vcmp.ne.f32.partialorder %v494_v39, 0.0  ;;  %vm531_vm14 = vcmp.ne.f32.partialorder %v496_v44, 0.0  ;;  %v540_v36 = vsel %vm524_vm8, 1.0, %v3259_v41 }
  0x2e   : > { %v541_v46 = vsel %vm525_vm9, 1.0, %v3259_v41  ;;  %vm530_vm15 = vcmp.ne.f32.partialorder %v495_v7, 0.0  ;;  %vm532_vm0 = vcmp.ne.f32.partialorder %v497_v45, 0.0  ;;  %vm533_vm3 = vcmp.ne.f32.partialorder %v498_v47, 0.0 }
  0x2f   : > { %v542_v2 = vsel %vm526_vm10, 1.0, %v3259_v41  ;;  %vm534_vm4 = vcmp.ne.f32.partialorder %v499_v20, 0.0  ;;  %v543_v34 = vsel %vm527_vm11, 1.0, %v3259_v41  ;;  %v544_v48 = vsel %vm528_vm12, 1.0, %v3259_v41 }
  0x30   : > { %v3488_v49 = vmax.f32 %v539_v28, %v3385_v42  ;;  %v545_v50 = vsel %vm529_vm13, 1.0, %v3259_v41  ;;  %v547_v51 = vsel %vm531_vm14, 1.0, %v3259_v41  ;;  %v3493_v52 = vmax.f32 %v540_v36, %v3473_v35  ;;  %v308_v28 = vld [vmem:[%s3326_s10 + $0x18] sm:$0x3f] }
  0x31   : > { %v3496_v53 = vmax.f32 %v541_v46, %v3476_v27  ;;  %v546_v54 = vsel %vm530_vm15, 1.0, %v3259_v41  ;;  %v548_v55 = vsel %vm532_vm0, 1.0, %v3259_v41  ;;  %v549_v56 = vsel %vm533_vm3, 1.0, %v3259_v41 }
  0x32   : > { %v3502_v57 = vmax.f32 %v542_v2, %v3479_v40  ;;  %v550_v58 = vsel %vm534_vm4, 1.0, %v3259_v41  ;;  %v3506_v59 = vmax.f32 %v543_v34, %v3385_v42  ;;  %v3509_v60 = vmax.f32 %v544_v48, %v3473_v35  ;;  %v312_v34 = vld [vmem:[%s3326_s10 + $0x38] sm:$0x3f]  ;;  %v319_v48 = vld [vmem:[%s3326_s10 + $0x70] sm:$0xff] }
  0x33   : > { %v580_v61 = vsel %vm369_vm1, %v3488_v49, 0.0  ;;  %v3514_v62 = vmax.f32 %v545_v50, %v3476_v27  ;;  %v3517_v63 = vmax.f32 %v547_v51, %v3385_v42  ;;  %v581_v0 = vsel %vm369_vm1, %v3493_v52, 0.0 }
  0x34   : > { %v583_v1 = vsel %vm369_vm1, %v3496_v53, 0.0  ;;  %v3525_v4 = vmax.f32 %v548_v55, %v3473_v35  ;;  %v582_v5 = vadd.f32 %v581_v0, %v580_v61  ;;  %v3530_v10 = vmax.f32 %v546_v54, %v3479_v40 }
  0x35   : > { %v3533_v11 = vmax.f32 %v549_v56, %v3476_v27  ;;  %v3536_v12 = vmax.f32 %v550_v58, %v3479_v40  ;;  %v585_v13 = vsel %vm391_vm2, %v3502_v57, 0.0  ;;  %v593_v16 = vsel %vm369_vm1, %v3506_v59, 0.0  ;;  %v316_v56 = vld [vmem:[%s3326_s10 + $0x58] sm:$0x3f] }
  0x36   : > { %v584_v15 = vadd.f32 %v583_v1, %v582_v5  ;;  %v594_v17 = vsel %vm369_vm1, %v3509_v60, 0.0  ;;  %v370_v22 = vsel %vm369_vm1, %v305_v3, 0.0  ;;  %v596_v23 = vsel %vm369_vm1, %v3514_v62, 0.0  ;;  %v320_v5 = vld [vmem:[%s3326_s10 + $0x78] sm:$0x3f] }
  0x37   : > { %v606_v24 = vsel %vm369_vm1, %v3517_v63, 0.0  ;;  %v371_v25 = vsel %vm369_vm1, %v309_v6, 0.0  ;;  %v373_v26 = vsel %vm369_vm1, %v313_v8, 0.0  ;;  %v607_v30 = vsel %vm369_vm1, %v3525_v4, 0.0 }
  0x38   : > { %v586_v29 = vadd.f32 %v585_v13, %v584_v15  ;;  %v372_v37 = vadd.f32 %v371_v25, %v370_v22  ;;  %v377_v38 = vsel %vm369_vm1, %v306_v14, 0.0  ;;  %v595_v39 = vadd.f32 %v594_v17, %v593_v16 }
  0x39   : > { %v375_v7 = vsel %vm369_vm1, %v317_v21, 0.0  ;;  %v378_v44 = vsel %vm369_vm1, %v310_v18, 0.0  ;;  %v380_v45 = vsel %vm369_vm1, %v314_v19, 0.0  ;;  %v598_v20 = vsel %vm391_vm2, %v3530_v10, 0.0 }
  0x3a   : > { %v587_v47 = vrot.slane %v586_v29, 4  ;;  %v374_v36 = vadd.f32 %v373_v26, %v372_v37  ;;  %v379_v46 = vadd.f32 %v378_v44, %v377_v38  ;;  %v608_v2 = vadd.f32 %v607_v30, %v606_v24 }
  0x3b   : > { %v382_v50 = vsel %vm369_vm1, %v318_v33, 0.0  ;;  %v384_v51 = vsel %vm369_vm1, %v307_v31, 0.0  ;;  %v385_v54 = vsel %vm369_vm1, %v311_v32, 0.0  ;;  %v387_v0 = vsel %vm369_vm1, %v315_v43, 0.0 }
  0x3c   : > { %v588_v55 = vadd.f32 %v587_v47, %v586_v29  ;;  %v376_v58 = vadd.f32 %v375_v7, %v374_v36  ;;  %v381_v61 = vadd.f32 %v380_v45, %v379_v46  ;;  %v597_v1 = vadd.f32 %v596_v23, %v595_v39 }
  0x3d   : > { %v609_v3 = vsel %vm369_vm1, %v3533_v11, 0.0  ;;  %v386_v6 = vadd.f32 %v385_v54, %v384_v51  ;;  %v392_v8 = vsel %vm391_vm2, %v308_v28, 0.0  ;;  %v389_v15 = vsel %vm369_vm1, %v319_v48, 0.0 }
  0x3e   : > { %v589_v13 = vrot.slane %v588_v55, 2  ;;  %v383_v14 = vadd.f32 %v382_v50, %v381_v61  ;;  %v393_v16 = vsel %vm391_vm2, %v312_v34, 0.0  ;;  %v611_v17 = vsel %vm391_vm2, %v3536_v12, 0.0 }
  0x3f   : > { %v388_v18 = vadd.f32 %v387_v0, %v386_v6  ;;  %v394_v19 = vadd.f32 %v393_v16, %v392_v8  ;;  %v395_v21 = vsel %vm391_vm2, %v316_v56, 0.0  ;;  %v610_v23 = vadd.f32 %v609_v3, %v608_v2 }
  0x40   : > { %v590_v22 = vadd.f32 %v589_v13, %v588_v55  ;;  %v397_v24 = vsel %vm391_vm2, %v320_v5, 0.0  ;;  %v484_v25 = vmul.f32 0.25, %v376_v58  ;;  %v599_v26 = vadd.f32 %v598_v20, %v597_v1 }
  0x41   : > { %v390_v29 = vadd.f32 %v389_v15, %v388_v18  ;;  %v396_v30 = vadd.f32 %v395_v21, %v394_v19  ;;  %v485_v31 = vmul.f32 0.25, %v383_v14  ;;  %v612_v39 = vadd.f32 %v611_v17, %v610_v23 }
  0x42   : > { %v591_v32 = vrot.slane %v590_v22, 1  ;;  %vm519_vm5 = vcmp.ne.f32.partialorder %v484_v25, 0.0  ;;  %v600_v44 = vrot.slane %v599_v26, 4  ;;  %vm3261_vm9 = vmmov 1  }
  0x43   : > { %v398_v33 = vadd.f32 %v397_v24, %v396_v30  ;;  %v486_v37 = vmul.f32 0.25, %v390_v29  ;;  %vm520_vm6 = vcmp.ne.f32.partialorder %v485_v31, 0.0  ;;  %v535_v43 = vsel %vm519_vm5, 1.0, %v3259_v41 }
  0x44   : > { %v592_v38 = vadd.f32 %v591_v32, %v590_v22  ;;  %v536_v7 = vsel %vm520_vm6, 1.0, %v3259_v41  ;;  %v3588_v47 = vmax.f32 %v535_v43, %v3385_v42  ;;  %v613_v2 = vrot.slane %v612_v39, 4 }
  0x45   : > { %v487_v45 = vmul.f32 0.25, %v398_v33  ;;  %vm521_vm7 = vcmp.ne.f32.partialorder %v486_v37, 0.0  ;;  %v3592_v28 = vmax.f32 %v536_v7, %v3473_v35  ;;  %v601_v50 = vadd.f32 %v600_v44, %v599_v26 }
  0x46   : > { %3243 = vrsqrt.f32 %v592_v38  ;;  %v537_v20 = vsel %vm521_vm7, 1.0, %v3259_v41  ;;  %v567_v46 = vsel %vm369_vm1, %v3588_v47, 0.0  ;;  %v614_v61 = vadd.f32 %v613_v2, %v612_v39 }
  0x47   : > { %vm522_vm8 = vcmp.ne.f32.partialorder %v487_v45, 0.0  ;;  %v3595_v36 = vmax.f32 %v537_v20, %v3476_v27  ;;  %v568_v48 = vsel %vm369_vm1, %v3592_v28, 0.0  ;;  %v602_v0 = vrot.slane %v601_v50, 2 }
  0x48   : > { %v538_v34 = vsel %vm522_vm8, 1.0, %v3259_v41  ;;  %v569_v54 = vadd.f32 %v568_v48, %v567_v46  ;;  %v615_v6 = vrot.slane %v614_v61, 2  ;;  %vm1391_vm11 = vcmask 130048  }
  0x49   : > { %v3603_v51 = vmax.f32 %v538_v34, %v3479_v40  ;;  %v570_v55 = vsel %vm369_vm1, %v3595_v36, 0.0  ;;  %v603_v8 = vadd.f32 %v602_v0, %v601_v50  ;;  %vm3264_vm12 = vmmov 0  }
  0x4a   : > { %v571_v56 = vadd.f32 %v570_v55, %v569_v54  ;;  %v616_v19 = vadd.f32 %v615_v6, %v614_v61  ;;  %vm2634_vm13 = vcmask 32768  }
  0x4b   : > { %v572_v58 = vsel %vm391_vm2, %v3603_v51, 0.0  ;;  %v604_v18 = vrot.slane %v603_v8, 1 }
  0x4c   : > { %v573_v1 = vadd.f32 %v572_v58, %v571_v56  ;;  %v617_v25 = vrot.slane %v616_v19, 1 }
  0x4d   : > { %v605_v24 = vadd.f32 %v604_v18, %v603_v8 }
  0x4e   : > { %v574_v3 = vrot.slane %v573_v1, 4  ;;  %v618_v29 = vadd.f32 %v617_v25, %v616_v19 }
  0x50   : > { %v3609_v5 = vpop.eup %3243  ;;  %v575_v14 = vadd.f32 %v574_v3, %v573_v1 }
  0x51   : > { %v627_v13 = vmul.f32 %v3609_v5, %v3385_v42  ;;  %v628_v15 = vmul.f32 %v3609_v5, %v3473_v35  ;;  %v630_v37 = vmul.f32 %v3609_v5, %v3479_v40  ;;  %v629_v34 = vmul.f32 %v3609_v5, %v3476_v27 }
  0x52   : > { %v576_v17 = vrot.slane %v575_v14, 2 }
  0x53   : > { %v651_v16 = vsel %vm369_vm1, %v627_v13, 0.0  ;;  %v654_v22 = vsel %vm369_vm1, %v628_v15, 0.0  ;;  %v660_v45 = vsel %vm391_vm2, %v630_v37, 0.0  ;;  %v657_v54 = vsel %vm369_vm1, %v629_v34, 0.0  ;;  %v3673_v15 = vld [vmem:[%s3908_s4] sm:$0xff] }
  0x54   : > { %652 = vadd.xlane.f32.xlu1 %v651_v16  ;;  %v577_v21 = vadd.f32 %v576_v17, %v575_v14  ;;  %v3260_v16 = vmov 0  }
  0x55   : > { %3239 = vset.pattern.permute.xlu1 %v3260_v16  ;;  %3238 = vset.pattern.permute.xlu0 %v3260_v16 }
  0x56   : > { %v578_v23 = vrot.slane %v577_v21, 1 }
  0x58   : > { %655 = vadd.xlane.f32.xlu1 %v654_v22  ;;  %v579_v26 = vadd.f32 %v578_v23, %v577_v21 }
  0x5a   : > { %3245 = vrsqrt.f32 %v579_v26 }
  0x5b   : > { %3247 = vrsqrt.f32 %v605_v24 }
  0x5c   : > { %3249 = vrsqrt.f32 %v618_v29 }
  0x64   : > { %v3617_v30 = vpop.eup %3245 }
  0x65   : > { %v623_v31 = vmul.f32 %v3617_v30, %v3385_v42  ;;  %v624_v32 = vmul.f32 %v3617_v30, %v3473_v35  ;;  %v626_v33 = vmul.f32 %v3617_v30, %v3479_v40  ;;  %v3627_v38 = vpop.eup %3247  ;;  %v625_v44 = vmul.f32 %v3617_v30, %v3476_v27 }
  0x66   : > { %v632_v20 = vmul.f32 %v3627_v38, %v3473_v35  ;;  %v3637_v46 = vpop.eup %3249  ;;  %v631_v55 = vmul.f32 %v3627_v38, %v3385_v42  ;;  %v634_v58 = vmul.f32 %v3627_v38, %v3479_v40  ;;  %v633_v6 = vmul.f32 %v3627_v38, %v3476_v27 }
  0x67   : > { %v639_v39 = vsel %vm369_vm1, %v623_v31, 0.0  ;;  %v648_v43 = vsel %vm391_vm2, %v626_v33, 0.0  ;;  %v642_v7 = vsel %vm369_vm1, %v624_v32, 0.0  ;;  %v645_v2 = vsel %vm369_vm1, %v625_v44, 0.0 }
  0x68   : > { %640 = vadd.xlane.f32.xlu0 %v639_v39  ;;  %649 = vadd.xlane.f32.xlu1 %v648_v43  ;;  %v666_v48 = vsel %vm369_vm1, %v632_v20, 0.0  ;;  %v636_v50 = vmul.f32 %v3637_v46, %v3473_v35  ;;  %v663_v61 = vsel %vm369_vm1, %v631_v55, 0.0  ;;  %v635_v0 = vmul.f32 %v3637_v46, %v3385_v42 }
  0x69   : > { %v672_v35 = vsel %vm391_vm2, %v634_v58, 0.0  ;;  %v638_v1 = vmul.f32 %v3637_v46, %v3479_v40  ;;  %v669_v13 = vsel %vm369_vm1, %v633_v6, 0.0  ;;  %v637_v42 = vmul.f32 %v3637_v46, %v3476_v27  ;;  %v3668_v40 = vld [vmem:[%s3908_s4 + $0x8] sm:$0xff] }
  0x6a   : > { %v678_v56 = vsel %vm369_vm1, %v636_v50, 0.0  ;;  %v675_v3 = vsel %vm369_vm1, %v635_v0, 0.0 }
  0x6b   : > { %v684_v8 = vsel %vm391_vm2, %v638_v1, 0.0  ;;  %v681_v14 = vsel %vm369_vm1, %v637_v42, 0.0  ;;  %vm1052_vm2 = vcmask 1045504  }
  0x6c   : > { %643 = vadd.xlane.f32.xlu0 %v642_v7  ;;  %661 = vadd.xlane.f32.xlu1 %v660_v45  ;;  %vm3706_vm10 = vmpackc.low %vm1052_vm2, %vm3261_vm9 }
  0x70   : > { %646 = vadd.xlane.f32.xlu0 %v645_v2  ;;  %667 = vadd.xlane.f32.xlu1 %v666_v48 }
  0x74   : > { %658 = vadd.xlane.f32.xlu0 %v657_v54  ;;  %679 = vadd.xlane.f32.xlu1 %v678_v56 }
  0x78   : > { %664 = vadd.xlane.f32.xlu0 %v663_v61  ;;  %673 = vadd.xlane.f32.xlu1 %v672_v35 }
  0x7c   : > { %676 = vadd.xlane.f32.xlu0 %v675_v3  ;;  %685 = vadd.xlane.f32.xlu1 %v684_v8 }
  0x80   : > { %670 = vadd.xlane.f32.xlu0 %v669_v13 }
  0x84   : > { %682 = vadd.xlane.f32.xlu0 %v681_v14 }
  0x8d   : > { %1043 = vperm.xlu1 %3239, %v3668_v40  }
  0x9a   : > { %1038 = vperm.xlu0 %3238, %v3673_v15  }
  0xe1   : > { %v653_v27 = vpop.xlane.xlu1 %652 }
  0xe2   : > { %v691_v19 = vmul.f32 %v653_v27, %v3488_v49 }
  0xe4   : > { %v707_v29 = vmul.f32 %v3609_v5, %v691_v19 }
  0xe5   : > { %v656_v23 = vpop.xlane.xlu1 %655 }
  0xe6   : > { %v2883_v17 = vpop.f32.mrb[0].mxu0  ;;  %v3677_v18 = vpop.f32.mrb[0].mxu1  ;;  %v692_v24 = vmul.f32 %v656_v23, %v3493_v52 }
  0xe7   : > { %v802_v21 = vpop.f32.mrb[1].mxu0  ;;  %v877_v22 = vpop.f32.mrb[1].mxu1 }
  0xe8   : > { %2907 = vmatprep.mubr.msk.f32.mxu0 %vm369_vm1, %v802_v21  ;;  %2918 = vmatprep.mubr.msk.f32.mxu1 %vm369_vm1, %v877_v22  ;;  %v708_v31 = vmul.f32 %v3609_v5, %v692_v24 }
  0xea   : > { %v3683_v25 = vpop.f32.mrb[2].mxu0  ;;  %v3685_v26 = vpop.f32.mrb[2].mxu1  ;;  %v3689_v49 = vpack.c.bf16 %v708_v31, %v707_v29 }
  0xeb   : > { %v952_v32 = vpop.f32.mrb[3].mxu0  ;;  %v1027_v33 = vpop.f32.mrb[3].mxu1 }
  0xec   : > { %3098 = vmatprep.subr.bf16.mxu1 %v3689_v49 }
  0xed   : > { %3100 = vmatpush3.bf16.msra.mxu1 %v3689_v49 }
  0xf5   : > { %v641_v37 = vpop.xlane.xlu0 %640  ;;  %v650_v39 = vpop.xlane.xlu1 %649 }
  0xf6   : > { %v687_v52 = vmul.f32 %v641_v37, %v3588_v47  ;;  %v690_v45 = vmul.f32 %v650_v39, %v3603_v51 }
  0xf8   : > { %v703_v20 = vmul.f32 %v3617_v30, %v687_v52  ;;  %v706_v54 = vmul.f32 %v3617_v30, %v690_v45 }
  0xf9   : > { %v644_v43 = vpop.xlane.xlu0 %643  ;;  %v662_v7 = vpop.xlane.xlu1 %661 }
  0xfa   : > { %v688_v44 = vmul.f32 %v644_v43, %v3592_v28  ;;  %v694_v47 = vmul.f32 %v662_v7, %v3502_v57 }
  0xfc   : > { %v704_v2 = vmul.f32 %v3617_v30, %v688_v44  ;;  %v710_v0 = vmul.f32 %v3609_v5, %v694_v47 }
  0xfd   : > { %v647_v34 = vpop.xlane.xlu0 %646  ;;  %v668_v48 = vpop.xlane.xlu1 %667 }
  0xfe   : > { %v3698_v50 = vpack.c.bf16 %v704_v2, %v703_v20  ;;  %v689_v55 = vmul.f32 %v647_v34, %v3595_v36  ;;  %v696_v57 = vmul.f32 %v668_v48, %v3509_v60  ;;  %v726_v20 = vld [vmem:[%s3907_s3 + $0x8] sm:$0xff] }
 0x100   : > { %v705_v56 = vmul.f32 %v3617_v30, %v689_v55  ;;  %3088 = vmatprep.subr.bf16.mxu0 %v3698_v50  ;;  %v712_v6 = vmul.f32 %v3627_v38, %v696_v57 }
 0x101   : > { %3090 = vmatpush3.bf16.msra.mxu0 %v3698_v50  ;;  %v659_v28 = vpop.xlane.xlu0 %658  ;;  %v680_v58 = vpop.xlane.xlu1 %679 }
 0x102   : > { %v3710_v61 = vpack.c.bf16 %v706_v54, %v705_v56  ;;  %v693_v36 = vmul.f32 %v659_v28, %v3496_v53  ;;  %v700_v60 = vmul.f32 %v680_v58, %v3525_v4 }
 0x104   : > { %v709_v30 = vmul.f32 %v3609_v5, %v693_v36  ;;  %3093 = vmatprep.subr.msk.bf16.mxu0 %vm3706_vm10, %v3710_v61 }
 0x105   : > { %3096 = vmatpush3.bf16.msk.msra.mxu0 %vm3706_vm10, %v3710_v61  ;;  %v665_v35 = vpop.xlane.xlu0 %664  ;;  %v674_v1 = vpop.xlane.xlu1 %673 }
 0x106   : > { %v3722_v3 = vpack.c.bf16 %v710_v0, %v709_v30  ;;  %v695_v53 = vmul.f32 %v665_v35, %v3506_v59  ;;  %v716_v59 = vmul.f32 %v3637_v46, %v700_v60  ;;  %v698_v42 = vmul.f32 %v674_v1, %v3530_v10 }
 0x108   : > { %v711_v5 = vmul.f32 %v3627_v38, %v695_v53  ;;  %3103 = vmatprep.subr.msk.bf16.mxu1 %vm3706_vm10, %v3722_v3  ;;  %2908 = vmatmul.mubr.msk.f32.vlgmr.msra.gmra.mrb[4].mxu0 %vm369_vm1, %v2883_v17  ;;  %v714_v19 = vmul.f32 %v3627_v38, %v698_v42 }
 0x109   : > { %3106 = vmatpush3.bf16.msk.msra.mxu1 %vm3706_vm10, %v3722_v3  ;;  %v677_v8 = vpop.xlane.xlu0 %676  ;;  %2929 = vmatprep.mubr.msk.f32.mxu0 %vm369_vm1, %v952_v32  ;;  %v686_v14 = vpop.xlane.xlu1 %685 }
 0x10a   : > { %v3736_v13 = vpack.c.bf16 %v712_v6, %v711_v5  ;;  %v699_v4 = vmul.f32 %v677_v8, %v3517_v63  ;;  %v702_v10 = vmul.f32 %v686_v14, %v3536_v12  ;;  %v3263_v5 = vmov 0.0|0.0   ;;  %v2038_v8 = vld [vmem:[%s3909_s5] sm:$0x1] }
 0x10c   : > { %v715_v16 = vmul.f32 %v3637_v46, %v699_v4  ;;  %3108 = vmatprep.subr.bf16.mxu0 %v3736_v13  ;;  %2919 = vmatmul.mubr.msk.f32.vlgmr.msra.gmra.mrb[4].mxu1 %vm369_vm1, %v3677_v18  ;;  %v718_v23 = vmul.f32 %v3637_v46, %v702_v10 }
 0x10d   : > { %v671_v27 = vpop.xlane.xlu0 %670  ;;  %3110 = vmatpush3.bf16.msra.mxu0 %v3736_v13  ;;  %2940 = vmatprep.mubr.msk.f32.mxu1 %vm369_vm1, %v1027_v33  ;;  %v1044_v12 = vpop.permute.xlu1 %1043 }
 0x10e   : > { %v3747_v17 = vpack.c.bf16 %v716_v59, %v715_v16  ;;  %v697_v63 = vmul.f32 %v671_v27, %v3514_v62 }
 0x110   : > { %v713_v21 = vmul.f32 %v3627_v38, %v697_v63  ;;  %3118 = vmatprep.subr.bf16.mxu1 %v3747_v17 }
 0x111   : > { %v683_v22 = vpop.xlane.xlu0 %682  ;;  %3120 = vmatpush3.bf16.msra.mxu1 %v3747_v17 }
 0x112   : > { %v3755_v18 = vpack.c.bf16 %v714_v19, %v713_v21  ;;  %v701_v24 = vmul.f32 %v683_v22, %v3533_v11  ;;  %v725_v11 = vld [vmem:[%s3907_s3] sm:$0xff] }
 0x114   : > { %v717_v29 = vmul.f32 %v3637_v46, %v701_v24  ;;  %3113 = vmatprep.subr.msk.bf16.mxu0 %vm3706_vm10, %v3755_v18 }
 0x115   : > { %3116 = vmatpush3.bf16.msk.msra.mxu0 %vm3706_vm10, %v3755_v18 }
 0x116   : > { %v3766_v62 = vpack.c.bf16 %v718_v23, %v717_v29 }
 0x118   : > { %3123 = vmatprep.subr.msk.bf16.mxu1 %vm3706_vm10, %v3766_v62  ;;  %2930 = vmatmul.mubr.msk.f32.vlgmr.msra.gmra.mrb[6].mxu0 %vm369_vm1, %v3683_v25 }
 0x119   : > { %3126 = vmatpush3.bf16.msk.msra.mxu1 %vm3706_vm10, %v3766_v62  ;;  %2947 = vmatprep.mubr.msk.f32.mxu0 %vm1391_vm11, %v725_v11  ;;  %v1039_v38 = vpop.permute.xlu0 %1038 }
 0x11c   : > { %2941 = vmatmul.mubr.msk.f32.vlgmr.msra.gmra.mrb[6].mxu1 %vm369_vm1, %v3685_v26 }
 0x11d   : > { %2954 = vmatprep.mubr.msk.f32.mxu1 %vm1391_vm11, %v725_v11 }
 0x1db   : > { %v2909_v46 = vpop.f32.mrb[4].mxu0 }
 0x1dc   : > { %v1128_v25 = vadd.f32 %v2909_v46, %v1044_v12  ;;  %v1122_v31 = vpop.f32.mrb[5].mxu0 }
 0x1dd   : > { %v1123_v32 = vadd.f32 %v1122_v31, %v1039_v38 }
 0x1de   : > { %v1384_v33 = vmax.f32 %v1128_v25, 0.0 }
 0x1df   : > { %v2920_v37 = vpop.f32.mrb[4].mxu1  ;;  %v1383_v39 = vmax.f32 %v1123_v32, 0.0 }
 0x1e0   : > { %v1212_v52 = vadd.f32 %v2920_v37, %v1044_v12  ;;  %v1206_v26 = vpop.f32.mrb[5].mxu1  ;;  %v2334_v37 = vld [vmem:[%s3910_s6] sm:$0xff] }
 0x1e1   : > { %v1207_v43 = vadd.f32 %v1206_v26, %v1039_v38  ;;  %v3127_v7 = vpack.c.bf16 %v1384_v33, %v1383_v39  ;;  %v2335_v39 = vld [vmem:[%s3910_s6 + $0x8] sm:$0xff] }
 0x1e2   : > { %v1386_v44 = vmax.f32 %v1212_v52, 0.0 }
 0x1e3   : > { %v1385_v45 = vmax.f32 %v1207_v43, 0.0  ;;  %3128 = vmatprep.subr.bf16.mxu0 %v3127_v7 }
 0x1e4   : > { %3130 = vmatpush3.bf16.msra.mxu0 %v3127_v7 }
 0x1e5   : > { %v3131_v2 = vpack.c.bf16 %v1386_v44, %v1385_v45  ;;  %v3196_v44 = vpack.c.bf16 %v2335_v39, %v2334_v37 }
 0x1e7   : > { %3132 = vmatprep.subr.bf16.mxu1 %v3131_v2  ;;  %2948 = vmatmul.mubr.msk.f32.vlgmr.msra.gmra.mrb[8].mxu0 %vm1391_vm11, %v726_v20 }
 0x1e8   : > { %3134 = vmatpush3.bf16.msra.mxu1 %v3131_v2  ;;  %2961 = vmatprep.mubr.msk.f32.mxu0 %vm1391_vm11, %v725_v11  ;;  %v2337_v2 = vld [vmem:[%s3910_s6 + $0x18] sm:$0x3f] }
 0x1eb   : > { %v2931_v34 = vpop.f32.mrb[6].mxu0  ;;  %2955 = vmatmul.mubr.msk.f32.vlgmr.msra.gmra.mrb[8].mxu1 %vm1391_vm11, %v726_v20 }
 0x1ec   : > { %v1296_v48 = vadd.f32 %v2931_v34, %v1044_v12  ;;  %v1290_v54 = vpop.f32.mrb[7].mxu0  ;;  %2968 = vmatprep.mubr.msk.f32.mxu1 %vm1391_vm11, %v725_v11 }
 0x1ed   : > { %v1291_v55 = vadd.f32 %v1290_v54, %v1039_v38 }
 0x1ee   : > { %v1388_v47 = vmax.f32 %v1296_v48, 0.0  ;;  %v2046_v48 = vsub.s32 0, %v3338_v9 }
 0x1ef   : > { %v1387_v56 = vmax.f32 %v1291_v55, 0.0  ;;  %v2942_v28 = vpop.f32.mrb[6].mxu1 }
 0x1f0   : > { %v1380_v58 = vadd.f32 %v2942_v28, %v1044_v12  ;;  %v1374_v0 = vpop.f32.mrb[7].mxu1 }
 0x1f1   : > { %v3135_v36 = vpack.c.bf16 %v1388_v47, %v1387_v56  ;;  %v1375_v57 = vadd.f32 %v1374_v0, %v1039_v38 }
 0x1f2   : > { %v1390_v30 = vmax.f32 %v1380_v58, 0.0 }
 0x1f3   : > { %v1389_v35 = vmax.f32 %v1375_v57, 0.0  ;;  %3136 = vmatprep.subr.bf16.mxu0 %v3135_v36 }
 0x1f4   : > { %3138 = vmatpush3.bf16.msra.mxu0 %v3135_v36 }
 0x1f5   : > { %v3139_v1 = vpack.c.bf16 %v1390_v30, %v1389_v35  ;;  %3144 = vmatprep.subr.bf16.mxu0 %v3698_v50 }
 0x1f7   : > { %3140 = vmatprep.subr.bf16.mxu1 %v3139_v1  ;;  %2962 = vmatmul.mubr.msk.f32.vlgmr.msra.gmra.mrb[10].mxu0 %vm1391_vm11, %v726_v20 }
 0x1f8   : > { %3142 = vmatpush3.bf16.msra.mxu1 %v3139_v1  ;;  %3146 = vmatpush3.bf16.msra.mxu0 %v3698_v50  ;;  %v3262_v50 = vmov 1  }
 0x1f9   : > { %3154 = vmatprep.subr.bf16.mxu1 %v3689_v49  ;;  %3149 = vmatprep.subr.msk.bf16.mxu0 %vm3706_vm10, %v3710_v61 }
 0x1fa   : > { %3240 = vset.pattern.permute.xlu1 %v3262_v50 }
 0x1fb   : > { %2969 = vmatmul.mubr.msk.f32.vlgmr.msra.gmra.mrb[10].mxu1 %vm1391_vm11, %v726_v20  ;;  %1699 = vperm.xlu1 %3240, %v3673_v15   ;;  %v2336_v20 = vld [vmem:[%s3910_s6 + $0x10] sm:$0xff] }
 0x1fc   : > { %3156 = vmatpush3.bf16.msra.mxu1 %v3689_v49  ;;  %3152 = vmatpush3.bf16.msk.msra.mxu0 %vm3706_vm10, %v3710_v61  ;;  %v3199_v34 = vpack.c.bf16 %v2337_v2, %v2336_v20 }
 0x1fd   : > { %3159 = vmatprep.subr.msk.bf16.mxu1 %vm3706_vm10, %v3722_v3  ;;  %3164 = vmatprep.subr.bf16.mxu0 %v3736_v13 }
 0x1ff   : > { %1703 = vperm.xlu1 %3240, %v3668_v40  }
 0x200   : > { %3162 = vmatpush3.bf16.msk.msra.mxu1 %vm3706_vm10, %v3722_v3 }
 0x201   : > { %3174 = vmatprep.subr.bf16.mxu1 %v3747_v17 }
 0x27a   : > { %v1700_v59 = vpop.permute.xlu1 %1699 }
 0x27e   : > { %v1704_v4 = vpop.permute.xlu1 %1703 }
 0x2ba   : > { %v2949_v49 = vpop.f32.mrb[8].mxu0 }
 0x2bb   : > { %v1464_v61 = vpop.f32.mrb[9].mxu0 }
 0x2bc   : > { %2979 = vmatprep.mubr.msk.f32.mxu0 %vm369_vm1, %v1464_v61 }
 0x2bd   : > { %2980 = vmatmul.mubr.msk.f32.vlgmr.msra.gmra.mrb[12].mxu0 %vm369_vm1, %v2949_v49 }
 0x2be   : > { %v2956_v6 = vpop.f32.mrb[8].mxu1  ;;  %3166 = vmatpush3.bf16.msra.mxu0 %v3736_v13  ;;  %v3265_v13 = vmov 16  }
 0x2bf   : > { %v1539_v53 = vpop.f32.mrb[9].mxu1  ;;  %3169 = vmatprep.subr.msk.bf16.mxu0 %vm3706_vm10, %v3755_v18  ;;  %3241 = vset.pattern.permute.xlu1 %v3265_v13 }
 0x2c0   : > { %2990 = vmatprep.mubr.msk.f32.mxu1 %vm369_vm1, %v1539_v53  ;;  %3242 = vset.pattern.permute.xlu0 %v3265_v13 }
 0x2c1   : > { %2991 = vmatmul.mubr.msk.f32.vlgmr.msra.gmra.mrb[12].mxu1 %vm369_vm1, %v2956_v6  ;;  %2041 = vperm.xlu1 %3241, %v2038_v8  }
 0x2c2   : > { %3176 = vmatpush3.bf16.msra.mxu1 %v3747_v17  ;;  %3172 = vmatpush3.bf16.msk.msra.mxu0 %vm3706_vm10, %v3755_v18 }
 0x2c3   : > { %3179 = vmatprep.subr.msk.bf16.mxu1 %vm3706_vm10, %v3766_v62  ;;  %3183 = vmatprep.subr.bf16.mxu0 %v3263_v5 }
 0x2c6   : > { %3182 = vmatpush3.bf16.msk.msra.mxu1 %vm3706_vm10, %v3766_v62 }
 0x2c7   : > { %3186 = vmatprep.subr.bf16.mxu1 %v3263_v5 }
 0x2ca   : > { %v2963_v40 = vpop.f32.mrb[10].mxu0 }
 0x2cb   : > { %v1614_v15 = vpop.f32.mrb[11].mxu0 }
 0x2cc   : > { %3001 = vmatprep.mubr.msk.f32.mxu0 %vm369_vm1, %v1614_v15 }
 0x2cd   : > { %3002 = vmatmul.mubr.msk.f32.vlgmr.msra.gmra.mrb[14].mxu0 %vm369_vm1, %v2963_v40  ;;  %v2338_v40 = vld [vmem:[%s3910_s6 + $0x1e] sm:$0x1] }
 0x2ce   : > { %v2970_v3 = vpop.f32.mrb[10].mxu1  ;;  %3019 = vmatprep.mubr.msk.f32.mxu0 %vm3264_vm12, %v3259_v41 }
 0x2cf   : > { %v1689_v60 = vpop.f32.mrb[11].mxu1 }
 0x2d0   : > { %3012 = vmatprep.mubr.msk.f32.mxu1 %vm369_vm1, %v1689_v60 }
 0x2d1   : > { %3013 = vmatmul.mubr.msk.f32.vlgmr.msra.gmra.mrb[14].mxu1 %vm369_vm1, %v2970_v3 }
 0x2d2   : > { %3026 = vmatprep.mubr.msk.f32.mxu1 %vm3264_vm12, %v3259_v41 }
 0x340   : > { %v2042_v54 = vpop.permute.xlu1 %2041 }
 0x341   : > { %v2047_v55 = vrot.slane %v2042_v54, %v2046_v48 }
 0x390   : > { %v2981_v42 = vpop.f32.mrb[12].mxu0 }
 0x391   : > { %v1784_v14 = vadd.f32 %v2981_v42, %v1704_v4  ;;  %v1778_v16 = vpop.f32.mrb[13].mxu0 }
 0x392   : > { %v1779_v27 = vadd.f32 %v1778_v16, %v1700_v59 }
 0x393   : > { %v2031_v17 = vmax.f32 %v1784_v14, 0.0 }
 0x394   : > { %v2992_v19 = vpop.f32.mrb[12].mxu1  ;;  %v2030_v63 = vmax.f32 %v1779_v27, 0.0 }
 0x395   : > { %v1865_v10 = vadd.f32 %v2992_v19, %v1704_v4  ;;  %v1859_v21 = vpop.f32.mrb[13].mxu1 }
 0x396   : > { %v3184_v22 = vpack.c.bf16 %v2031_v17, %v2030_v63  ;;  %v1860_v18 = vadd.f32 %v1859_v21, %v1700_v59 }
 0x397   : > { %v2033_v23 = vmax.f32 %v1865_v10, 0.0 }
 0x398   : > { %v2032_v24 = vmax.f32 %v1860_v18, 0.0  ;;  %3185 = vmatpush3.bf16.msra.mxu0 %v3184_v22 }
 0x399   : > { %3189 = vmatprep.subr.bf16.mxu0 %v3263_v5 }
 0x39a   : > { %v3187_v29 = vpack.c.bf16 %v2033_v23, %v2032_v24 }
 0x39b   : > { %3020 = vmatmul.mubr.msk.f32.vlgmr.msra.gmra.mrb[16].mxu0 %vm1391_vm11, %v2038_v8 }
 0x39c   : > { %3188 = vmatpush3.bf16.msra.mxu1 %v3187_v29  ;;  %3033 = vmatprep.mubr.msk.f32.mxu0 %vm3264_vm12, %v3259_v41 }
 0x39d   : > { %3192 = vmatprep.subr.bf16.mxu1 %v3263_v5 }
 0x39f   : > { %3027 = vmatmul.mubr.msk.f32.vlgmr.msra.gmra.mrb[16].mxu1 %vm1391_vm11, %v2038_v8 }
 0x3a0   : > { %v3003_v62 = vpop.f32.mrb[14].mxu0  ;;  %3040 = vmatprep.mubr.msk.f32.mxu1 %vm3264_vm12, %v3259_v41 }
 0x3a1   : > { %v1946_v11 = vadd.f32 %v3003_v62, %v1704_v4  ;;  %v1940_v12 = vpop.f32.mrb[15].mxu0 }
 0x3a2   : > { %v1941_v38 = vadd.f32 %v1940_v12, %v1700_v59 }
 0x3a3   : > { %v2035_v46 = vmax.f32 %v1946_v11, 0.0 }
 0x3a4   : > { %v2034_v25 = vmax.f32 %v1941_v38, 0.0  ;;  %v3014_v31 = vpop.f32.mrb[14].mxu1 }
 0x3a5   : > { %v2027_v32 = vadd.f32 %v3014_v31, %v1704_v4  ;;  %v2021_v33 = vpop.f32.mrb[15].mxu1 }
 0x3a6   : > { %v3190_v52 = vpack.c.bf16 %v2035_v46, %v2034_v25  ;;  %v2022_v26 = vadd.f32 %v2021_v33, %v1700_v59 }
 0x3a7   : > { %v2037_v43 = vmax.f32 %v2027_v32, 0.0 }
 0x3a8   : > { %v2036_v7 = vmax.f32 %v2022_v26, 0.0  ;;  %3191 = vmatpush3.bf16.msra.mxu0 %v3190_v52 }
 0x3a9   : > { %3195 = vmatprep.subr.bf16.mxu0 %v3263_v5 }
 0x3aa   : > { %v3193_v45 = vpack.c.bf16 %v2037_v43, %v2036_v7 }
 0x3ab   : > { %3034 = vmatmul.mubr.msk.f32.vlgmr.msra.gmra.mrb[18].mxu0 %vm1391_vm11, %v2038_v8 }
 0x3ac   : > { %3194 = vmatpush3.bf16.msra.mxu1 %v3193_v45  ;;  %3197 = vmatpush3.bf16.msra.mxu0 %v3196_v44 }
 0x3ad   : > { %3202 = vmatprep.subr.bf16.mxu1 %v3263_v5  ;;  %3198 = vmatprep.subr.bf16.mxu0 %v3263_v5 }
 0x3ae   : > { %3051 = vmatprep.mubr.msk.f32.mxu0 %vm3264_vm12, %v3259_v41 }
 0x3af   : > { %3041 = vmatmul.mubr.msk.f32.vlgmr.msra.gmra.mrb[18].mxu1 %vm1391_vm11, %v2038_v8 }
 0x3b0   : > { %3204 = vmatpush3.bf16.msra.mxu1 %v3196_v44  ;;  %3062 = vmatprep.mubr.msk.f32.mxu1 %vm3264_vm12, %v3259_v41 }
 0x3b1   : > { %3205 = vmatprep.subr.bf16.mxu1 %v3263_v5  ;;  %3201 = vmatpush3.bf16.msk.msra.mxu0 %vm3706_vm10, %v3199_v34 }
 0x3b2   : > { %3209 = vmatprep.subr.bf16.mxu0 %v3263_v5 }
 0x3b4   : > { %3208 = vmatpush3.bf16.msk.msra.mxu1 %vm3706_vm10, %v3199_v34 }
 0x3b5   : > { %3216 = vmatprep.subr.bf16.mxu1 %v3263_v5 }
 0x46e   : > { %v2116_v47 = vpop.f32.mrb[16].mxu0 }
 0x46f   : > { %v2117_v56 = vadd.f32 %v2116_v47, %v2047_v55  ;;  %v3021_v28 = vpop.f32.mrb[17].mxu0 }
 0x471   : > { %v2330_v58 = vmax.f32 %v2117_v56, 0.0 }
 0x472   : > { %v2186_v0 = vpop.f32.mrb[16].mxu1 }
 0x473   : > { %v2187_v36 = vadd.f32 %v2186_v0, %v2047_v55  ;;  %v3028_v57 = vpop.f32.mrb[17].mxu1  ;;  %3052 = vmatmul.mubr.msk.f32.vlgmr.msra.gmra.mrb[20].mxu0 %vm369_vm1, %v2330_v58 }
 0x474   : > { %3211 = vmatpush3.bf16.msra.mxu0 %v3196_v44  ;;  %3073 = vmatprep.mubr.msk.f32.mxu0 %vm3264_vm12, %v3259_v41 }
 0x475   : > { %v2331_v30 = vmax.f32 %v2187_v36, 0.0  ;;  %3212 = vmatprep.subr.bf16.mxu0 %v3263_v5 }
 0x477   : > { %3063 = vmatmul.mubr.msk.f32.vlgmr.msra.gmra.mrb[20].mxu1 %vm369_vm1, %v2331_v30 }
 0x478   : > { %3218 = vmatpush3.bf16.msra.mxu1 %v3196_v44  ;;  %3215 = vmatpush3.bf16.msk.msra.mxu0 %vm3706_vm10, %v3199_v34 }
 0x479   : > { %3219 = vmatprep.subr.bf16.mxu1 %v3263_v5  ;;  %3084 = vmatprep.mubr.msk.f32.mxu1 %vm3264_vm12, %v3259_v41 }
 0x47c   : > { %3222 = vmatpush3.bf16.msk.msra.mxu1 %vm3706_vm10, %v3199_v34 }
 0x47e   : > { %v2256_v9 = vpop.f32.mrb[18].mxu0 }
 0x47f   : > { %v2257_v35 = vadd.f32 %v2256_v9, %v2047_v55  ;;  %v3035_v1 = vpop.f32.mrb[19].mxu0 }
 0x481   : > { %v2332_v50 = vmax.f32 %v2257_v35, 0.0 }
 0x482   : > { %v2326_v49 = vpop.f32.mrb[18].mxu1 }
 0x483   : > { %v2327_v61 = vadd.f32 %v2326_v49, %v2047_v55  ;;  %v3042_v6 = vpop.f32.mrb[19].mxu1  ;;  %3074 = vmatmul.mubr.msk.f32.vlgmr.msra.gmra.mrb[22].mxu0 %vm369_vm1, %v2332_v50 }
 0x485   : > { %v2333_v53 = vmax.f32 %v2327_v61, 0.0 }
 0x487   : > { %3085 = vmatmul.mubr.msk.f32.vlgmr.msra.gmra.mrb[22].mxu1 %vm369_vm1, %v2333_v53 }
 0x546   : > { %v2411_v41 = vpop.f32.mrb[20].mxu0 }
 0x547   : > { %v2412_v51 = vadd.f32 %v2411_v41, %v2338_v40  ;;  %v3053_v15 = vpop.f32.mrb[21].mxu0 }
 0x549   : > { %2635 = vst.msk [vmem:[%s303_s17] sm:$0x1] %vm2634_vm13, %v2412_v51 }
 0x54a   : > { %v2484_v3 = vpop.f32.mrb[20].mxu1 }
 0x54b   : > { %v2485_v60 = vadd.f32 %v2484_v3, %v2338_v40  ;;  %v3064_v5 = vpop.f32.mrb[21].mxu1 }
 0x54d   : > { %2636 = vst.msk [vmem:[%s303_s17 + $0x1] sm:$0x1] %vm2634_vm13, %v2485_v60 }
 0x556   : > { %v2557_v8 = vpop.f32.mrb[22].mxu0 }
 0x557   : > { %v2558_v13 = vadd.f32 %v2557_v8, %v2338_v40  ;;  %v3075_v59 = vpop.f32.mrb[23].mxu0 }
 0x559   : > { %2637 = vst.msk [vmem:[%s303_s17 + $0x2] sm:$0x1] %vm2634_vm13, %v2558_v13 }
 0x55a   : > { %v2630_v4 = vpop.f32.mrb[22].mxu1 }
 0x55b   : > { %v2631_v42 = vadd.f32 %v2630_v4, %v2338_v40  ;;  %v3086_v14 = vpop.f32.mrb[23].mxu1 }
 0x55d   : > { %2638 = vst.msk [vmem:[%s303_s17 + $0x3] sm:$0x1] %vm2634_vm13, %v2631_v42 }
 0x55e PF: > { %s17_s24 = sadd.s32 1, %s3257_s24  }
 0x55f   : > { %p14_p4 = scmp.ge.s32.totalorder %s17_s24, 4  }
 0x561   :  { %16 = sbr.rel (!%p14_p4) target bundleno = 1 (0x1), region = 81 }

</bundles_post_ra>
